<compile_context>
chip_gen: v6e
topology: v6e:2x2x1
jax: 0.10.0
libtpu: 0.0.40
codegen_flags: <defaults>
</compile_context>

<pallas_src>
import math

import jax
import jax.numpy as jnp
from jax.experimental import pallas as pl
from jax.experimental.pallas import tpu as pltpu


def _round_up(x, m):
    return ((x + m - 1) // m) * m


def _choose_tile_f(F, max_tile=512):
    """Pick an F-tile: whole F if small, else a multiple of 128 dividing F."""
    if F <= max_tile:
        return F
    for t in range(max_tile, 127, -128):  # 512, 384, 256, 128
        if F % t == 0:
            return t
    return F  # fallback: full F block (always a legal block shape)


def _sgc_kernel(x_ref, w_ref, b_ref, o_ref, acc_ref):
    # x_ref: (N, Ft) bf16, w_ref: (Ft, Cpad) bf16, b_ref: (1, Cpad) f32
    # o_ref: (N, Cpad) f32, acc_ref: (N, Cpad) f32 scratch (logits accumulator)
    k = pl.program_id(1)

    @pl.when(k == 0)
    def _():
        acc_ref[...] = jnp.zeros_like(acc_ref)

    acc_ref[...] += jnp.dot(
        x_ref[...], w_ref[...], preferred_element_type=jnp.float32
    )

    @pl.when(k == pl.num_programs(1) - 1)
    def _():
        logits = acc_ref[...] + b_ref[...]
        # Softmax over the node axis (axis=0 of this per-batch tile == dim=1
        # of the original (B, N, C) tensor), independently per class column.
        m = jnp.max(logits, axis=0, keepdims=True)
        e = jnp.exp(logits - m)
        denom = jnp.sum(e, axis=0, keepdims=True)
        o_ref[...] = (e * pl.reciprocal(denom, approx=True)).astype(o_ref.dtype)


def sgc_forward(x, w, b, *, tile_f=None):
    """x: (B, N, F); w: (F, C); b: (C,). Returns (B, sqrt(N), sqrt(N), C) f32.

    Inputs are cast to bf16 for the matmul (f32 accumulation in-kernel).
    """
    B, N, F = x.shape
    Fw, C = w.shape
    assert Fw == F, (Fw, F)
    s = int(math.isqrt(N))
    assert s * s == N, "node count must be a perfect square (as in the PyTorch .view)"

    # Lane-dense output: pad the class dim to a multiple of 128.
    Cpad = _round_up(C, 128)

    x_bf = x.astype(jnp.bfloat16)
    w_pad = jnp.zeros((F, Cpad), jnp.bfloat16).at[:, :C].set(w.astype(jnp.bfloat16))
    b_pad = jnp.zeros((1, Cpad), jnp.float32).at[:, :C].set(b.astype(jnp.float32))

    tf = _choose_tile_f(F) if tile_f is None else tile_f
    assert F % tf == 0, (F, tf)
    kt = F // tf

    out = pl.pallas_call(
        _sgc_kernel,
        out_shape=jax.ShapeDtypeStruct((B, N, Cpad), jnp.float32),
        grid_spec=pltpu.PrefetchScalarGridSpec(
            num_scalar_prefetch=0,
            grid=(B, kt),  # reduction (F-tile) axis last
            in_specs=[
                # per-batch, per-F-tile slice of x; batch dim squeezed out
                pl.BlockSpec((None, N, tf), lambda i, k: (i, 0, k)),
                # matching F-tile of the (padded) weight
                pl.BlockSpec((tf, Cpad), lambda i, k: (k, 0)),
                # full (padded) bias, same block every step
                pl.BlockSpec((1, Cpad), lambda i, k: (0, 0)),
            ],
            out_specs=pl.BlockSpec((None, N, Cpad), lambda i, k: (i, 0, 0)),
            scratch_shapes=[pltpu.VMEM((N, Cpad), jnp.float32)],
        ),
        compiler_params=pltpu.CompilerParams(
            dimension_semantics=("parallel", "arbitrary"),
            vmem_limit_bytes=32 * 1024 * 1024,
        ),
    )(x_bf, w_pad, b_pad)

    # Drop the padded class columns (their softmax values are harmless 1/N),
    # then apply the .view() reshape from the PyTorch module.
    return out[:, :, :C].reshape(B, s, s, C)


def sgc_reference(x, w, b):
    # Reference uses the same bf16 quantization of x / w as the kernel path.
    xb = x.astype(jnp.bfloat16)
    wb = w.astype(jnp.bfloat16)
    alpha = jnp.einsum(
        "bnf,fc->bnc", xb, wb, preferred_element_type=jnp.float32
    ) + b.astype(jnp.float32)
    p = jax.nn.softmax(alpha, axis=1)
    B, N, C = alpha.shape
    s = int(math.isqrt(N))
    return p.reshape(B, s, s, C)


if __name__ == "__main__":
    # Small shapes consistent with the module: batch=2, nodes=16 (4x4 grid),
    # nfeat=32, nclass=8. (Tune/benchmark only at realistic shapes.)
    B, N, NFEAT, NCLASS = 2, 16, 32, 8

    key = jax.random.PRNGKey(0)
    kx, kw, kb = jax.random.split(key, 3)

    x = jax.random.normal(kx, (B, N, NFEAT), dtype=jnp.float32)

    # Deterministic nn.Linear-style init (uniform in +/- 1/sqrt(nfeat)).
    bound = 1.0 / math.sqrt(NFEAT)
    w = jax.random.uniform(kw, (NFEAT, NCLASS), jnp.float32, -bound, bound)
    b = jax.random.uniform(kb, (NCLASS,), jnp.float32, -bound, bound)

    out = sgc_forward(x, w, b)
    out = jax.block_until_ready(out)

    ref = sgc_reference(x, w, b)
    assert out.shape == (B, 4, 4, NCLASS), out.shape
    # bf16 matmul + approx reciprocal: softmax probabilities agree to ~1e-3.
    assert jnp.allclose(out, ref, atol=2e-3, rtol=2e-3), float(
        jnp.max(jnp.abs(out - ref))
    )

    print("KERNEL_OK")
</pallas_src>

<mosaic_0001>
module attributes {stable_mosaic.version = 11 : i64} {
  func.func @_sgc_kernel(%arg0: i32, %arg1: i32, %arg2: memref<1x16x32xbf16, #tpu.memory_space<vmem>>, %arg3: memref<32x128xbf16, #tpu.memory_space<vmem>>, %arg4: memref<1x128xf32, #tpu.memory_space<vmem>>, %arg5: memref<1x16x128xf32, #tpu.memory_space<vmem>>, %arg6: memref<16x128xf32, #tpu.memory_space<vmem>>) attributes {dimension_semantics = [#tpu.dimension_semantics<parallel>, #tpu.dimension_semantics<arbitrary>], iteration_bounds = array<i64: 2, 1>, scalar_prefetch = 0 : i64, scratch_operands = 1 : i64, tpu.core_type = #tpu.core_type<tc>, window_params = [{transform_indices = @transform_0, window_bounds = array<i64: 1, 16, 32>}, {transform_indices = @transform_1, window_bounds = array<i64: 32, 128>}, {pipeline_mode = #tpu.pipeline_mode<synchronous>, transform_indices = @transform_2, window_bounds = array<i64: 1, 128>}, {transform_indices = @transform_3, window_bounds = array<i64: 1, 16, 128>}]} {
    %c0_i32 = arith.constant 0 : i32
    %0 = arith.cmpi eq, %arg1, %c0_i32 : i32
    %1 = arith.extui %0 : i1 to i32
    %c0_i32_0 = arith.constant 0 : i32
    %2 = arith.cmpi ne, %1, %c0_i32_0 : i32
    scf.if %2 {
      %cst_11 = arith.constant 0.000000e+00 : f32
      %13 = vector.broadcast %cst_11 : f32 to vector<16x128xf32>
      %c0_12 = arith.constant 0 : index
      %c0_13 = arith.constant 0 : index
      %14 = vector.load %arg6[%c0_12, %c0_13] : memref<16x128xf32, #tpu.memory_space<vmem>>, vector<16x128xf32>
      tpu.vector_store %arg6[%c0_12, %c0_13], %13 {strides = array<i32>} : memref<16x128xf32, #tpu.memory_space<vmem>>, vector<16x128xf32>,
    } else {
    }
    %c0 = arith.constant 0 : index
    %c0_1 = arith.constant 0 : index
    %3 = vector.load %arg6[%c0, %c0_1] : memref<16x128xf32, #tpu.memory_space<vmem>>, vector<16x128xf32>
    %c0_2 = arith.constant 0 : index
    %c0_3 = arith.constant 0 : index
    %c0_4 = arith.constant 0 : index
    %4 = vector.load %arg2[%c0_2, %c0_3, %c0_4] : memref<1x16x32xbf16, #tpu.memory_space<vmem>>, vector<1x16x32xbf16>
    %5 = vector.shape_cast %4 : vector<1x16x32xbf16> to vector<16x32xbf16>
    %c0_5 = arith.constant 0 : index
    %c0_6 = arith.constant 0 : index
    %6 = vector.load %arg3[%c0_5, %c0_6] : memref<32x128xbf16, #tpu.memory_space<vmem>>, vector<32x128xbf16>
    %cst = arith.constant dense<0.000000e+00> : vector<16x128xf32>
    %7 = tpu.matmul %5, %6, %cst {dimension_numbers = #tpu.dot_dimension_numbers<[1], [0], [0], [1], [0, 0, 1, 1], [], []>} : vector<16x32xbf16>, vector<32x128xbf16>, vector<16x128xf32> -> vector<16x128xf32>
    %8 = arith.addf %3, %7 : vector<16x128xf32>
    %c0_7 = arith.constant 0 : index
    %c0_8 = arith.constant 0 : index
    %9 = vector.load %arg6[%c0_7, %c0_8] : memref<16x128xf32, #tpu.memory_space<vmem>>, vector<16x128xf32>
    tpu.vector_store %arg6[%c0_7, %c0_8], %8 {strides = array<i32>} : memref<16x128xf32, #tpu.memory_space<vmem>>, vector<16x128xf32>,
    %c0_i32_9 = arith.constant 0 : i32
    %10 = arith.cmpi eq, %arg1, %c0_i32_9 : i32
    %11 = arith.extui %10 : i1 to i32
    %c0_i32_10 = arith.constant 0 : i32
    %12 = arith.cmpi ne, %11, %c0_i32_10 : i32
    scf.if %12 {
      %c0_11 = arith.constant 0 : index
      %c0_12 = arith.constant 0 : index
      %13 = vector.load %arg6[%c0_11, %c0_12] : memref<16x128xf32, #tpu.memory_space<vmem>>, vector<16x128xf32>
      %c0_13 = arith.constant 0 : index
      %c0_14 = arith.constant 0 : index
      %14 = vector.load %arg4[%c0_13, %c0_14] : memref<1x128xf32, #tpu.memory_space<vmem>>, vector<1x128xf32>
      %15 = vector.broadcast %14 : vector<1x128xf32> to vector<16x128xf32>
      %16 = arith.addf %13, %15 : vector<16x128xf32>
      %cst_15 = arith.constant dense<0xFF800000> : vector<128xf32>
      %17 = vector.multi_reduction <maximumf>, %16, %cst_15 [0] : vector<16x128xf32> to vector<128xf32>
      %18 = vector.shape_cast %17 : vector<128xf32> to vector<1x128xf32>
      %19 = vector.broadcast %18 : vector<1x128xf32> to vector<16x128xf32>
      %20 = arith.subf %16, %19 : vector<16x128xf32>
      %21 = math.exp %20 : vector<16x128xf32>
      %cst_16 = arith.constant dense<0.000000e+00> : vector<128xf32>
      %22 = vector.multi_reduction <add>, %21, %cst_16 [0] : vector<16x128xf32> to vector<128xf32>
      %23 = vector.shape_cast %22 : vector<128xf32> to vector<1x128xf32>
      %24 = tpu.reciprocal %23 {approx = true} : vector<1x128xf32> -> vector<1x128xf32>
      %25 = vector.broadcast %24 : vector<1x128xf32> to vector<16x128xf32>
      %26 = arith.mulf %21, %25 : vector<16x128xf32>
      %c0_17 = arith.constant 0 : index
      %c0_18 = arith.constant 0 : index
      %c0_19 = arith.constant 0 : index
      %27 = vector.load %arg5[%c0_17, %c0_18, %c0_19] : memref<1x16x128xf32, #tpu.memory_space<vmem>>, vector<1x16x128xf32>
      %28 = vector.shape_cast %27 : vector<1x16x128xf32> to vector<16x128xf32>
      %29 = vector.shape_cast %26 : vector<16x128xf32> to vector<1x16x128xf32>
      tpu.vector_store %arg5[%c0_17, %c0_18, %c0_19], %29 {strides = array<i32>} : memref<1x16x128xf32, #tpu.memory_space<vmem>>, vector<1x16x128xf32>,
    } else {
    }
    return
  }
  func.func @transform_0(%arg0: i32, %arg1: i32) -> (i32, i32, i32) {
    %c0_i32 = arith.constant 0 : i32
    %c0_i32_0 = arith.constant 0 : i32
    return %arg0, %c0_i32, %arg1 : i32, i32, i32
  }
  func.func @transform_1(%arg0: i32, %arg1: i32) -> (i32, i32) {
    %c0_i32 = arith.constant 0 : i32
    %c0_i32_0 = arith.constant 0 : i32
    return %arg1, %c0_i32 : i32, i32
  }
  func.func @transform_2(%arg0: i32, %arg1: i32) -> (i32, i32) {
    %c0_i32 = arith.constant 0 : i32
    %c0_i32_0 = arith.constant 0 : i32
    %c0_i32_1 = arith.constant 0 : i32
    return %c0_i32, %c0_i32_0 : i32, i32
  }
  func.func @transform_3(%arg0: i32, %arg1: i32) -> (i32, i32, i32) {
    %c0_i32 = arith.constant 0 : i32
    %c0_i32_0 = arith.constant 0 : i32
    %c0_i32_1 = arith.constant 0 : i32
    return %arg0, %c0_i32, %c0_i32_0 : i32, i32, i32
  }
}

</mosaic_0001>

<bundles_post_ra>
// kernel: tpu_custom_call.1
= control target key start
LH: loop header
LB: loop body
LE: loop exit
PB: predicated region body
PF: predicated region fallthrough
CT: control target
= control target key end

     0   :  { %8 = vsyncpa [#allocation4], 0  ;;  %s940_s0 = inlined_call_operand.hbm [shape: bf16[2,16,32], index: 0, kind: input, shape index: {}]   ;;  %s941_s1 = inlined_call_operand.hbm [shape: bf16[32,128], index: 1, kind: input, shape index: {}]   ;;  %s942_s2 = inlined_call_operand.vmem [shape: f32[1,128], index: 2, kind: input, shape index: {}]   ;;  %s943_s3 = inlined_call_operand.hbm [shape: f32[2,16,128], index: 3, kind: output, shape index: {}]  }
   0x1   :  { %10 = vsyncpa [#allocation4 + $0x1], 0 }
   0x2   :  { %11 = vsyncpa [#allocation7], 0 }
   0x3   :  { %12 = vsyncpa [#allocation5], 0 }
   0x4   :  { %14 = vsyncpa [#allocation5 + $0x1], 0  ;;  %s749_s12 = smov 0   ;;  %s751_s13 = smov 0  }
   0x5   :  { %s753_s14 = smov 0   ;;  %s755_s15 = smov 0  }
   0x6   :  { %s757_s16 = smov 0   ;;  %s759_s17 = smov 0  }
   0x7 LB: > { %s457_s18 = sadd.s32 4294967295, %s718_s17   ;;  %s458_s19 = sadd.s32 4294967294, %s718_s17   ;;  %s718_s17 = sphi %s759_s17, %s20_s17   ;;  %s714_s16 = sphi %s757_s16, %s965_s16   ;;  %s710_s15 = sphi %s755_s15, %s964_s15   ;;  %s706_s14 = sphi %s753_s14, %s963_s14   ;;  %s702_s13 = sphi %s751_s13, %s962_s13   ;;  %s698_s12 = sphi %s749_s12, %s961_s12  }
   0x8   : > { %p54_p0 = scmp.ne.s32.totalorder %s702_s13, %s698_s12  ;;  %p783_p1 = scmp.eq.s32.totalorder %s457_s18, 0 }
   0x9   : > { %p787_p2 = scmp.eq.s32.totalorder %s457_s18, 1  ;;  %p131_p3 = scmp.eq.s32.totalorder %s458_s19, 1 }
   0xa   : > { %p793_p4 = por %p783_p1, %p54_p0  ;;  %p459_p5 = scmp.ge.s32.totalorder %s718_s17, 1 }
   0xb   : > { %p798_p6 = por %p131_p3, %p54_p0  ;;  %p138_p7 = scmp.lt.s32.totalorder %s718_s17, 3 }
   0xc   : > { %s949_s22 = scalar_select %p793_p4, 1, 0 }
   0xd   : > { %s950_s23 = scalar_select %p798_p6, 1, 0 }
   0xe   : > { %p803_p8 = pnand %p459_p5, %p138_p7  ;;  %s720_s25 = smov [#allocation6]  }
   0xf   : > { %s153_s26 = sshll.u32 %s720_s25, 4  ;;  %s32_s28 = sadd.s32 1, %s714_s16  ;;  %s154_s26 = int_to_ptr.vmem [resolvable:$true] %s153_s26 }
  0x10   : > { %p500_p9 = pneg %p803_p8  ;;  %s591_s29 = scalar_lea.vmem %s154_s26, 256 }
  0x11   : > { %p592_p13 = scmp.ne.s32.totalorder %s154_s26, %s591_s29  ;;  %p599_p5 = scmp.lt.s32.totalorder %s154_s26, %s154_s26 }
  0x12   : > { %p812_p11 = pnand %p500_p9, %p783_p1  ;;  %p600_p7 = scmp.lt.s32.totalorder %s591_s29, %s591_s29 }
  0x14   : > { %p582_p12 = pneg %p812_p11  ;;  %p601_p6 = por %p600_p7, %p599_p5 }
  0x16   : > { %p594_p0 = pnand %p592_p13, %p582_p12 }
  0x18   : > { %p595_p3 = pneg %p594_p0 }
  0x1a   : > { %p602_p4 = pnand %p601_p6, %p595_p3 }
  0x1c   : > { %605 = shalt.err (!%p602_p4)
}
  0x1d   : > { %s945_s30 = smov 64   ;;  %s946_s4 = smov 4  }
  0x1e   : > { %503 = dma.hbm_to_vmem [thread:$0]  (!%p812_p11), %s941_s1, 256, %s154_s26, [#allocation7], %s945_s30, %s945_s30, %s946_s4  }
  0x1f   : > { %p34_p4 = scmp.ge.s32.totalorder %s32_s28, 2  ;;  %s41_s7 = sadd.s32 1, %s706_s14 }
  0x20   : > { %p48_p6 = scmp.ne.s32.totalorder %s706_s14, %s702_s13  ;;  %p49_p9 = scmp.eq.s32.totalorder %s718_s17, 0 }
  0x21   : > { %s967_s28 = smov (%p34_p4, %s32_s28), 0  ;;  %p513_p0 = scmp.lt.s32.totalorder %s718_s17, 2 }
  0x22   : > { %p833_p12 = por %p49_p9, %p48_p6  ;;  %p839_p13 = por %p787_p2, %p48_p6 }
  0x23   : > { %s36_s10 = ssub.s32 %s714_s16, %s967_s28  ;;  %s170_s11 = sand.u32 1, %s706_s14  }
  0x24   : > { %p39_p11 = scmp.eq.s32.totalorder %s36_s10, 0  ;;  %s462_s18 = sshll.u32 %s170_s11, 3 }
  0x25   : > { %s479_s25 = sshll.u32 %s714_s16, 7  ;;  %s174_s5 = scalar_lea.vmem [#allocation3], %s462_s18 }
  0x26   : > { %s848_s19 = scalar_select %p39_p11, %s706_s14, %s41_s7  }
  0x27   : > { %s181_s29 = scalar_lea.hbm %s940_s0, %s479_s25  ;;  %s182_s6 = sshll.u32 %s174_s5, 4  ;;  %s183_s6 = int_to_ptr.vmem [resolvable:$true] %s182_s6 }
  0x28   : > { %p856_p2 = pnand %p513_p0, %p833_p12  ;;  %s171_s30 = scalar_lea.sflag [#allocation4], %s170_s11 }
  0x29   : > { %s619_s10 = scalar_lea.vmem %s183_s6, 128  ;;  %s723_s7 = smov [#allocation3]  }
  0x2a   : > { %p608_p3 = pneg %p856_p2  ;;  %p620_p5 = scmp.ne.s32.totalorder %s183_s6, %s619_s10 }
  0x2b   : > { %s624_s4 = sshll.u32 %s723_s7, 4  ;;  %s625_s4 = int_to_ptr.vmem [resolvable:$false] %s624_s4 }
  0x2c   : > { %p622_p7 = pnand %p620_p5, %p608_p3  ;;  %s626_s25 = scalar_lea.vmem %s625_s4, 256 }
  0x2d   : > { %p627_p6 = scmp.lt.s32.totalorder %s183_s6, %s625_s4  ;;  %p628_p9 = scmp.lt.s32.totalorder %s626_s25, %s619_s10 }
  0x2e   : > { %p623_p4 = pneg %p622_p7 }
  0x2f   : > { %p629_p11 = por %p628_p9, %p627_p6 }
  0x31   : > { %p630_p10 = pnand %p629_p11, %p623_p4 }
  0x33   : > { %633 = shalt.err (!%p630_p10)
}
  0x34   : > { %s956_s8 = smov 4   ;;  %s957_s18 = smov 64  }
  0x35   : > { %507 = dma.hbm_to_vmem [thread:$0]  (!%p856_p2), %s181_s29, 128, %s183_s6, %s171_s30, %s957_s18, %s957_s18, %s956_s8  }
  0x36   : > { %194 = sbr.rel (%p803_p8) target bundleno = 347 (0x15b), region = 32  ;;  %s870_s11 = sand.u32 (!%p803_p8), 1, %s702_s13  }
  0x37   : > { %s466_s4 = sshll.u32 (!%p803_p8), %s870_s11, 3  ;;  %s197_s26 = scalar_lea.sflag (!%p803_p8), [#allocation4], %s870_s11 }
  0x38   : > { %s200_s27 = scalar_lea.vmem (!%p803_p8), [#allocation3], %s466_s4  ;;  %p958_p12 = scmp.ne.s32.totalorder (!%p803_p8), %s949_s22, 0 }
  0x3b   : > { %685 = dma.done.wait (%p958_p12), %s197_s26, 128  }
  0x3c   : > { %687 = vsyncadd (%p958_p12), %s197_s26, 4294967168 }
  0x3d   : > { %689 = dma.done.wait (%p783_p1), [#allocation7], 256  }
  0x3e   : > { %691 = vsyncadd (%p783_p1), [#allocation7], 4294967040  ;;  %v724_v0 = vmov 0.0   ;;  %vm725_vm0 = vmmov 0   ;;  %v571_v1 = vld [vmem:[#allocation6 + $0x8] sm:$0xff]   ;;  %v572_v2 = vld [vmem:[#allocation6] sm:$0xff]  }
  0x3f   : > { %484 = vmatprep.subr.bf16.mxu0 %v724_v0  ;;  %488 = vmatprep.mubr.msk.bf16.mxu0 %vm725_vm0, %v724_v0  ;;  %v573_v3 = vld [vmem:[%s200_s27] sm:$0xff]   ;;  %vm260_vm1 = vcmask 261120   ;;  %s468_s20 = sshll.u32 %s870_s11, 4  ;;  %s480_s30 = sshll.u32 %s710_s15, 8 }
  0x40   : > { %485 = vmatpush3.bf16.msra.mxu0 %v571_v1  ;;  %v473_v5 = vld [vmem:[%s942_s2] ss:$0 sm:$0xff]  ;;  %s226_s29 = scalar_lea.vmem [#allocation8], %s468_s20  ;;  %s890_s10 = scalar_lea.hbm %s943_s3, %s480_s30 }
  0x41   : > { %486 = vmatprep.subr.bf16.mxu0 %v724_v0  ;;  %s362_s5 = sshll.u32 %s226_s29, 4  ;;  %s349_s7 = scalar_lea.sflag [#allocation5], %s870_s11  ;;  %s892_s5 = int_to_ptr.vmem [resolvable:$true] %s362_s5 }
  0x42   : > { %s634_s25 = scalar_lea.vmem %s892_s5, 256  ;;  %s726_s15 = smov [#allocation8]  }
  0x43   : > { %p635_p1 = scmp.ne.s32.totalorder %s892_s5, %s634_s25  ;;  %s638_s8 = sshll.u32 %s726_s15, 4  ;;  %s639_s8 = int_to_ptr.vmem [resolvable:$false] %s638_s8 }
  0x44   : > { %487 = vmatpush3.bf16.msra.mxu0 %v572_v2  ;;  %s640_s18 = scalar_lea.vmem %s639_s8, 512  ;;  %p641_p0 = scmp.lt.s32.totalorder %s892_s5, %s639_s8 }
  0x45   : > { %p636_p8 = pnand %p635_p1, %p839_p13  ;;  %p642_p2 = scmp.lt.s32.totalorder %s640_s18, %s634_s25 }
  0x47   : > { %489 = vmatmul.mubr.msk.bf16.vlgmr.msra.gmra.mxu0 %vm260_vm1, %v573_v3  ;;  %p637_p10 = pneg %p636_p8  ;;  %p643_p3 = por %p642_p2, %p641_p0 }
  0x49   : > { %p644_p5 = pnand %p643_p3, %p637_p10 }
 0x107   : > { %v298_v4 = vpop.f32.mrf.mxu0 }
 0x108   : > { %v321_v8 = vadd.f32 %v473_v5, %v298_v4 }
 0x109   : > { %v490_v6 = vpop.f32.mrf.mxu0 }
 0x10b   : > { %v301_v7 = vpop.f32.mrf.mxu0 }
 0x10c   : > { %v322_v9 = vadd.f32 %v473_v5, %v301_v7 }
 0x10d   : > { %v491_v10 = vpop.f32.mrf.mxu0 }
 0x10e   : > { %v323_v11 = vmax.f32 %v321_v8, %v322_v9 }
 0x110   : > { %v324_v12 = vrot.slane %v323_v11, 4 }
 0x112   : > { %v325_v13 = vmax.f32 %v323_v11, %v324_v12 }
 0x114   : > { %v326_v14 = vrot.slane %v325_v13, 2 }
 0x116   : > { %v327_v15 = vmax.f32 %v325_v13, %v326_v14 }
 0x118   : > { %v328_v16 = vrot.slane %v327_v15, 1 }
 0x11a   : > { %v329_v17 = vmax.f32 %v327_v15, %v328_v16 }
 0x11c   : > { %v330_v18 = vsub.f32 %v321_v8, %v329_v17  ;;  %v331_v19 = vsub.f32 %v322_v9, %v329_v17 }
 0x11e   : > { %v332_v20 = vmul.f32 1.442695, %v330_v18  ;;  %v334_v21 = vmul.f32 1.442695, %v331_v19 }
 0x120   : > { %574 = vpow2.f32 %v332_v20 }
 0x121   : > { %576 = vpow2.f32 %v334_v21 }
 0x12d   : > { %v575_v22 = vpop.eup %574 }
 0x12e   : > { %v577_v23 = vpop.eup %576 }
 0x12f   : > { %v336_v24 = vadd.f32 %v577_v23, %v575_v22 }
 0x131   : > { %v337_v25 = vrot.slane %v336_v24, 4 }
 0x133   : > { %v338_v26 = vadd.f32 %v337_v25, %v336_v24 }
 0x135   : > { %v339_v27 = vrot.slane %v338_v26, 2 }
 0x137   : > { %v340_v28 = vadd.f32 %v339_v27, %v338_v26 }
 0x139   : > { %v341_v29 = vrot.slane %v340_v28, 1 }
 0x13b   : > { %v342_v30 = vadd.f32 %v341_v29, %v340_v28 }
 0x13d   : > { %578 = vrcp.f32 %v342_v30 }
 0x14a   : > { %v579_v31 = vpop.eup %578 }
 0x14b   : > { %v345_v32 = vmul.f32 %v579_v31, %v577_v23  ;;  %v344_v33 = vmul.f32 %v579_v31, %v575_v22 }
 0x14d   : > { %346 = vst [vmem:[%s226_s29] sm:$0xff] %v344_v33  ;;  %347 = vst [vmem:[%s226_s29 + $0x8] sm:$0xff] %v345_v32 }
 0x14e   : > { %647 = shalt.err (!%p644_p5)
}
 0x14f   : > { %s648_s4 = scalar_lea.hbm %s890_s10, 256  ;;  %s652_s22 = scalar_lea.hbm %s943_s3, 512 }
 0x150   : > { %p649_p7 = scmp.ne.s32.totalorder %s890_s10, %s648_s4  ;;  %p653_p9 = scmp.lt.s32.totalorder %s890_s10, %s943_s3 }
 0x151   : > { %p654_p11 = scmp.lt.s32.totalorder %s652_s22, %s648_s4 }
 0x152   : > { %p650_p4 = pnand %p649_p7, %p839_p13 }
 0x153   : > { %p655_p12 = por %p654_p11, %p653_p9 }
 0x154   : > { %p651_p6 = pneg %p650_p4 }
 0x156   : > { %p656_p1 = pnand %p655_p12, %p651_p6 }
 0x158   : > { %659 = shalt.err (!%p656_p1)
}
 0x159   : > { %s727_s30 = smov 128   ;;  %s728_s29 = smov 8  }
 0x15a   : > { %498 = dma.vmem_to_hbm [thread:$0]  (%p839_p13), %s892_s5, 256, %s890_s10, %s349_s7, %s727_s30, %s727_s30, %s728_s29  }
 0x15b PF: > { %s377_s6 = sand.u32 1, %s698_s12   ;;  %p959_p8 = scmp.ne.s32.totalorder %s950_s23, 0 }
 0x15c   : > { %p960_p10 = scmp.ge.s32.totalorder %s718_s17, 2  ;;  %s378_s21 = scalar_lea.sflag [#allocation5], %s377_s6 }
 0x15e   : > { %p509_p0 = pnand %p960_p10, %p959_p8 }
 0x160   : > { %p510_p2 = pneg %p509_p0 }
 0x162   : > { %693 = dma.done.wait (%p510_p2), %s378_s21, 256  }
 0x163   : > { %695 = vsyncadd (%p510_p2), %s378_s21, 4294967040  ;;  %s20_s17 = sadd.s32 1, %s718_s17   ;;  %s961_s12 = smov %s702_s13 }
 0x164   : > { %p17_p3 = scmp.ge.s32.totalorder %s20_s17, 4   ;;  %s962_s13 = smov %s706_s14 }
 0x165   : > { %s963_s14 = smov %s848_s19  ;;  %s964_s15 = smov %s714_s16 }
 0x166   : > { %s965_s16 = smov %s967_s28  ;;  %19 = sbr.rel (!%p17_p3) target bundleno = 7 (0x7), region = 90 }
 0x16b   :  { %383 = vsyncpa [#allocation4], 1 }
 0x16c   :  { %385 = vsyncpa [#allocation4 + $0x1], 1 }
 0x16d   :  { %386 = vsyncpa [#allocation7], 1 }
 0x16e   :  { %387 = vsyncpa [#allocation5], 1 }
 0x16f   :  { %389 = vsyncpa [#allocation5 + $0x1], 1 }

</bundles_post_ra>
